<compile_context>
chip_gen: v6e
topology: v6e:2x2x1
jax: 0.10.0
libtpu: 0.0.40
codegen_flags: <defaults>
</compile_context>

<pallas_src>
import functools

import jax
import jax.numpy as jnp
from jax import lax
from jax.experimental import pallas as pl
from jax.experimental.pallas import tpu as pltpu

# ---- model hyper-parameters (mirror `args` in the PyTorch script) ------------
ALPHA = 0.2          # LeakyReLU slope of the GAT attention
BETA = 1.0           # clustering-score temperature (get_clust_score_pytorch)
F0MLP = True         # args.f0mlp  -> F_0 = fc_0(F_0) before the IB gradient
B1IN = False         # args.b1in   -> plain GraphConvolution path
# args.dropoutgat / args.dropoutgcn: dropout is a no-op in eval mode and is
# therefore omitted from this deterministic forward pass.

_VMEM = functools.partial(pl.BlockSpec, memory_space=pltpu.MemorySpace.VMEM)


# ==============================================================================
# Single fused Pallas kernel (full-array VMEM blocks, no grid — shapes are tiny)
# ==============================================================================
def _gib_fused_kernel(x_ref, adj_ref, yoh_ref, yoht_ref, cb_ref, q_ref,
                      gat_w_ref, a1_ref, a2t_ref, fc0_w_ref, fc0_b_ref,
                      gcn_w_ref, out_ref, *, update):
    f32 = jnp.float32
    x = x_ref[...]                                                     # (N, Din)
    adj = adj_ref[...]                                                 # (N, N)
    n = x.shape[0]
    h = gat_w_ref.shape[1]
    d_out = gcn_w_ref.shape[1]

    # ---------------- GraphAttentionLayer ----------------
    wh = jnp.dot(x, gat_w_ref[...], preferred_element_type=f32)        # F_0 = xW  (N,H)
    f1 = jnp.dot(wh, a1_ref[...], preferred_element_type=f32)          # (N, 1)
    # (1, N) row of scores: a2^T contracted against Wh (transpose folded in MXU)
    f2_row = lax.dot_general(a2t_ref[...], wh, (((1,), (1,)), ((), ())),
                             preferred_element_type=f32)               # (1, N)
    e = f1 + f2_row                                                    # (N, N)
    e = jnp.where(e > 0, e, ALPHA * e)                                 # LeakyReLU(0.2)
    logits = jnp.where(adj > 0, e, -9e15)
    m = jnp.max(logits, axis=1, keepdims=True)
    p = jnp.exp(logits - m)
    b0 = p * pl.reciprocal(jnp.sum(p, axis=1, keepdims=True), approx=True)  # B_0
    z0 = jnp.dot(b0, wh, preferred_element_type=f32)                   # Z_0 (N, H)
    gatout = jnp.where(z0 > 0, z0, jnp.exp(jnp.minimum(z0, 0.0)) - 1.0)  # ELU

    # ---------------- cluster score (get_clust_score_pytorch) ----------------
    def clust(feat, cents):
        ones_row = jnp.ones((1, cents.shape[1]), dtype=f32)
        c_sq = lax.dot_general(ones_row, cents * cents, (((1,), (1,)), ((), ())),
                               preferred_element_type=f32)             # (1, K)
        f_sq = jnp.sum(feat * feat, axis=1, keepdims=True)             # (N, 1)
        cross = lax.dot_general(feat, cents, (((1,), (1,)), ((), ())),
                                preferred_element_type=f32)            # (N, K)
        dist = jnp.sqrt(jnp.maximum(f_sq - 2.0 * cross + c_sq, 0.0))
        sc = jnp.exp(-BETA * dist) + 1e-10
        phi = sc * pl.reciprocal(jnp.sum(sc, axis=1, keepdims=True), approx=True)
        return phi, dist

    # centroids: per-class means of Z_0
    # TODO(synk): run_kmeans() (sklearn Lloyd, label-initialised) has no clean
    # Pallas equivalent; deterministic per-class means are used instead.
    yoh = yoh_ref[...]                                                 # (N, C)
    yoh_t = yoht_ref[...]                                              # (C, N)
    counts = jnp.sum(yoh_t, axis=1, keepdims=True)                     # (C, 1)
    inv_counts = pl.reciprocal(jnp.maximum(counts, 1.0), approx=True)
    ca = jnp.dot(yoh_t * inv_counts, z0, preferred_element_type=f32)   # C_a (C, H)
    phi_za, dist_za = clust(z0, ca)                                    # (N, C)

    if update:
        # ---------------- F_0 (optionally fc_0) ----------------
        f0 = wh
        if F0MLP:
            f0 = lax.dot_general(f0, fc0_w_ref[...], (((1,), (1,)), ((), ())),
                                 preferred_element_type=f32) + fc0_b_ref[...]

        # ---------------- get_grad_IB_B_large ----------------
        phi_xb, _ = clust(x, cb_ref[...])                              # (N, C)
        log_q = jnp.log(q_ref[...])                                    # (C, C)
        sum_log_phi_xb = jnp.sum(jnp.log(phi_xb), axis=1, keepdims=True)  # (N, 1)
        sum_phi = phi_za * sum_log_phi_xb                              # (N, C)
        sum_y_logq = jnp.dot(yoh, log_q, preferred_element_type=f32)   # (N, C)
        diff_b = sum_phi - sum_y_logq                                  # (N, C)

        # V[n,:] = sum_a diff_b[n,a] * U[n,a,:]   (U = analytic d(phi_Z_a)/dZ
        # Jacobian), expressed with 2-D matmuls only — no (N,C,H) temp.
        # TODO(synk): get_U() source is not in the reference; this is the
        # analytic Jacobian of the cluster score.
        inv_d = pl.reciprocal(jnp.maximum(dist_za, 1e-12), approx=True)  # (N, C)
        w = diff_b * phi_za
        pinv = phi_za * inv_d
        winv = w * inv_d
        mix = (jnp.sum(pinv, axis=1, keepdims=True) * z0
               - jnp.dot(pinv, ca, preferred_element_type=f32))        # (N, H)
        term2 = (jnp.sum(winv, axis=1, keepdims=True) * z0
                 - jnp.dot(winv, ca, preferred_element_type=f32))      # (N, H)
        v = BETA * (jnp.sum(w, axis=1, keepdims=True) * mix - term2)   # (N, H)

        # gradient_IBB_B = V @ F_0.T / n ;  B_1 = rownorm(B_0 - grad)
        grad = lax.dot_general(v, f0, (((1,), (1,)), ((), ())),
                               preferred_element_type=f32) * (1.0 / float(n))
        b1 = b0 - grad
        sumsq = jnp.sum(b1 * b1, axis=1, keepdims=True)
        b1 = b1 * lax.rsqrt(jnp.maximum(sumsq, 1e-24))                 # eps-guarded
    else:
        ri = lax.broadcasted_iota(jnp.int32, (n, n), 0)
        ci = lax.broadcasted_iota(jnp.int32, (n, n), 1)
        b1 = (ri == ci).astype(f32)                                    # identity

    # ---------------- GraphConvolution (b1in == False) + Z_1 ----------------
    xw = jnp.dot(gatout, gcn_w_ref[...], preferred_element_type=f32)   # (N, Dout)
    f1g = jnp.maximum(jnp.dot(adj, xw, preferred_element_type=f32), 0.0)  # relu
    z1 = jnp.dot(b1, f1g, preferred_element_type=f32)                  # Z_1 (N, Dout)

    # ---------------- lane-dense packed output slab ----------------
    width = out_ref.shape[1]

    def place(vals, offset):
        k = vals.shape[1]
        r = lax.broadcasted_iota(jnp.int32, (k, width), 0)
        cc = lax.broadcasted_iota(jnp.int32, (k, width), 1)
        sel = (cc == r + offset).astype(f32)
        return jnp.dot(vals, sel, preferred_element_type=f32)

    out_ref[...] = place(z1, 0) + place(z0, d_out) + place(phi_za, d_out + h)


# ==============================================================================
# Wrapper
# ==============================================================================
def gib_large_forward(params, x, support, y, c_b_prime, q, num_classes, update=True):
    n = x.shape[0]
    h = params["gat_W"].shape[1]
    d_out = params["gcn_W"].shape[1]
    c = num_classes

    y_one_hot = jax.nn.one_hot(y, num_classes, dtype=jnp.float32)      # (N, C)
    y_one_hot_t = y_one_hot.T                                          # (C, N)

    slab = max(128, ((d_out + h + c + 127) // 128) * 128)              # lane-dense width
    kernel = functools.partial(_gib_fused_kernel, update=update)

    out = pl.pallas_call(
        kernel,
        out_shape=jax.ShapeDtypeStruct((n, slab), jnp.float32),
        in_specs=[_VMEM()] * 12,
        out_specs=_VMEM(),
    )(x, support, y_one_hot, y_one_hot_t, c_b_prime, q,
      params["gat_W"], params["gat_a1"], params["gat_a2t"],
      params["fc0_W"], params["fc0_b"], params["gcn_W"])

    z1 = out[:, :d_out]
    z0 = out[:, d_out:d_out + h]
    phi_z_a = out[:, d_out + h:d_out + h + c]
    output = z1                                                        # b1in == False path
    return output, z1, z0, phi_z_a


def init_params(key, input_dim, hidden_dim, output_dim):
    k = jax.random.split(key, 6)
    s = 0.1
    return {
        "gat_W":   s * jax.random.normal(k[0], (input_dim, hidden_dim), jnp.float32),
        "gat_a1":  s * jax.random.normal(k[1], (hidden_dim, 1), jnp.float32),
        "gat_a2t": s * jax.random.normal(k[2], (1, hidden_dim), jnp.float32),
        "fc0_W":   s * jax.random.normal(k[3], (hidden_dim, hidden_dim), jnp.float32),
        "fc0_b":   s * jax.random.normal(k[4], (1, hidden_dim), jnp.float32),
        "gcn_W":   s * jax.random.normal(k[5], (hidden_dim, output_dim), jnp.float32),
    }


if __name__ == "__main__":
    N, D_IN, HIDDEN, D_OUT, C = 16, 8, 32, 8, 4
    key = jax.random.PRNGKey(0)
    kx, kc, kq, kp = jax.random.split(key, 4)

    x = jax.random.normal(kx, (N, D_IN), jnp.float32)
    # deterministic dense "support": ring adjacency + self loops
    idx = jnp.arange(N)
    adj = (jnp.eye(N, dtype=jnp.float32)
           + jnp.eye(N, dtype=jnp.float32)[(idx + 1) % N]
           + jnp.eye(N, dtype=jnp.float32)[(idx - 1) % N])
    support = jnp.minimum(adj, 1.0)
    y = (idx % C).astype(jnp.int32)                    # all C classes present
    c_b_prime = jax.random.normal(kc, (C, D_IN), jnp.float32)             # C_b_prime_np
    q = jax.nn.softmax(jax.random.normal(kq, (C, C), jnp.float32), axis=1)  # Q > 0

    params = init_params(kp, D_IN, HIDDEN, D_OUT)

    output, z1, z0, z0_clust = gib_large_forward(params, x, support, y,
                                                 c_b_prime, q, C, update=True)
    for t in (output, z1, z0, z0_clust):
        jax.block_until_ready(t)

    assert output.shape == (N, D_OUT)
    assert z1.shape == (N, D_OUT)
    assert z0.shape == (N, HIDDEN)
    assert z0_clust.shape == (N, C)
    assert bool(jnp.all(jnp.isfinite(output)))
    print("KERNEL_OK")
</pallas_src>

<mosaic_0001>
module attributes {stable_mosaic.version = 11 : i64} {
  func.func @_gib_fused_kernel(%arg0: memref<16x8xf32, #tpu.memory_space<vmem>>, %arg1: memref<16x16xf32, #tpu.memory_space<vmem>>, %arg2: memref<16x4xf32, #tpu.memory_space<vmem>>, %arg3: memref<4x16xf32, #tpu.memory_space<vmem>>, %arg4: memref<4x8xf32, #tpu.memory_space<vmem>>, %arg5: memref<4x4xf32, #tpu.memory_space<vmem>>, %arg6: memref<8x32xf32, #tpu.memory_space<vmem>>, %arg7: memref<32x1xf32, #tpu.memory_space<vmem>>, %arg8: memref<1x32xf32, #tpu.memory_space<vmem>>, %arg9: memref<32x32xf32, #tpu.memory_space<vmem>>, %arg10: memref<1x32xf32, #tpu.memory_space<vmem>>, %arg11: memref<32x8xf32, #tpu.memory_space<vmem>>, %arg12: memref<16x128xf32, #tpu.memory_space<vmem>>) attributes {dimension_semantics = [], scalar_prefetch = 0 : i64, scratch_operands = 0 : i64, tpu.core_type = #tpu.core_type<tc>} {
    %c0 = arith.constant 0 : index
    %c0_0 = arith.constant 0 : index
    %0 = vector.load %arg0[%c0, %c0_0] : memref<16x8xf32, #tpu.memory_space<vmem>>, vector<16x8xf32>
    %c0_1 = arith.constant 0 : index
    %c0_2 = arith.constant 0 : index
    %1 = vector.load %arg1[%c0_1, %c0_2] : memref<16x16xf32, #tpu.memory_space<vmem>>, vector<16x16xf32>
    %c0_3 = arith.constant 0 : index
    %c0_4 = arith.constant 0 : index
    %2 = vector.load %arg6[%c0_3, %c0_4] : memref<8x32xf32, #tpu.memory_space<vmem>>, vector<8x32xf32>
    %cst = arith.constant dense<0.000000e+00> : vector<16x32xf32>
    %3 = tpu.matmul %0, %2, %cst {dimension_numbers = #tpu.dot_dimension_numbers<[1], [0], [0], [1], [0, 0, 1, 1], [], []>} : vector<16x8xf32>, vector<8x32xf32>, vector<16x32xf32> -> vector<16x32xf32>
    %c0_5 = arith.constant 0 : index
    %c0_6 = arith.constant 0 : index
    %4 = vector.load %arg7[%c0_5, %c0_6] : memref<32x1xf32, #tpu.memory_space<vmem>>, vector<32x1xf32>
    %cst_7 = arith.constant dense<0.000000e+00> : vector<16x1xf32>
    %5 = tpu.matmul %3, %4, %cst_7 {dimension_numbers = #tpu.dot_dimension_numbers<[1], [0], [0], [1], [0, 0, 1, 1], [], []>} : vector<16x32xf32>, vector<32x1xf32>, vector<16x1xf32> -> vector<16x1xf32>
    %c0_8 = arith.constant 0 : index
    %c0_9 = arith.constant 0 : index
    %6 = vector.load %arg8[%c0_8, %c0_9] : memref<1x32xf32, #tpu.memory_space<vmem>>, vector<1x32xf32>
    %cst_10 = arith.constant dense<0.000000e+00> : vector<1x16xf32>
    %7 = tpu.matmul %6, %3, %cst_10 {dimension_numbers = #tpu.dot_dimension_numbers<[1], [1], [0], [0], [0, 0, 1, 0], [], []>} : vector<1x32xf32>, vector<16x32xf32>, vector<1x16xf32> -> vector<1x16xf32>
    %8 = vector.broadcast %5 : vector<16x1xf32> to vector<16x16xf32>
    %9 = vector.broadcast %7 : vector<1x16xf32> to vector<16x16xf32>
    %10 = arith.addf %8, %9 : vector<16x16xf32>
    %cst_11 = arith.constant 0.000000e+00 : f32
    %11 = vector.broadcast %cst_11 : f32 to vector<16x16xf32>
    %12 = arith.cmpf ogt, %10, %11 : vector<16x16xf32>
    %cst_12 = arith.constant 2.000000e-01 : f32
    %13 = vector.broadcast %cst_12 : f32 to vector<16x16xf32>
    %14 = arith.mulf %13, %10 : vector<16x16xf32>
    %15 = arith.select %12, %10, %14 : vector<16x16xi1>, vector<16x16xf32>
    %cst_13 = arith.constant 0.000000e+00 : f32
    %16 = vector.broadcast %cst_13 : f32 to vector<16x16xf32>
    %17 = arith.cmpf ogt, %1, %16 : vector<16x16xf32>
    %cst_14 = arith.constant -9.000000e+15 : f32
    %18 = vector.broadcast %cst_14 : f32 to vector<16x16xf32>
    %19 = arith.select %17, %15, %18 : vector<16x16xi1>, vector<16x16xf32>
    %cst_15 = arith.constant dense<0xFF800000> : vector<16xf32>
    %20 = vector.multi_reduction <maximumf>, %19, %cst_15 [1] : vector<16x16xf32> to vector<16xf32>
    %21 = vector.shape_cast %20 : vector<16xf32> to vector<16x1xf32>
    %22 = vector.broadcast %21 : vector<16x1xf32> to vector<16x16xf32>
    %23 = arith.subf %19, %22 : vector<16x16xf32>
    %24 = math.exp %23 : vector<16x16xf32>
    %cst_16 = arith.constant dense<0.000000e+00> : vector<16xf32>
    %25 = vector.multi_reduction <add>, %24, %cst_16 [1] : vector<16x16xf32> to vector<16xf32>
    %26 = vector.shape_cast %25 : vector<16xf32> to vector<16x1xf32>
    %27 = tpu.reciprocal %26 {approx = true} : vector<16x1xf32> -> vector<16x1xf32>
    %28 = vector.broadcast %27 : vector<16x1xf32> to vector<16x16xf32>
    %29 = arith.mulf %24, %28 : vector<16x16xf32>
    %cst_17 = arith.constant dense<0.000000e+00> : vector<16x32xf32>
    %30 = tpu.matmul %29, %3, %cst_17 {dimension_numbers = #tpu.dot_dimension_numbers<[1], [0], [0], [1], [0, 0, 1, 1], [], []>} : vector<16x16xf32>, vector<16x32xf32>, vector<16x32xf32> -> vector<16x32xf32>
    %cst_18 = arith.constant 0.000000e+00 : f32
    %31 = vector.broadcast %cst_18 : f32 to vector<16x32xf32>
    %32 = arith.cmpf ogt, %30, %31 : vector<16x32xf32>
    %cst_19 = arith.constant 0.000000e+00 : f32
    %33 = vector.broadcast %cst_19 : f32 to vector<16x32xf32>
    %34 = arith.minimumf %30, %33 : vector<16x32xf32>
    %35 = math.exp %34 : vector<16x32xf32>
    %cst_20 = arith.constant 1.000000e+00 : f32
    %36 = vector.broadcast %cst_20 : f32 to vector<16x32xf32>
    %37 = arith.subf %35, %36 : vector<16x32xf32>
    %38 = arith.select %32, %30, %37 : vector<16x32xi1>, vector<16x32xf32>
    %c0_21 = arith.constant 0 : index
    %c0_22 = arith.constant 0 : index
    %39 = vector.load %arg2[%c0_21, %c0_22] : memref<16x4xf32, #tpu.memory_space<vmem>>, vector<16x4xf32>
    %c0_23 = arith.constant 0 : index
    %c0_24 = arith.constant 0 : index
    %40 = vector.load %arg3[%c0_23, %c0_24] : memref<4x16xf32, #tpu.memory_space<vmem>>, vector<4x16xf32>
    %cst_25 = arith.constant dense<0.000000e+00> : vector<4xf32>
    %41 = vector.multi_reduction <add>, %40, %cst_25 [1] : vector<4x16xf32> to vector<4xf32>
    %42 = vector.shape_cast %41 : vector<4xf32> to vector<4x1xf32>
    %cst_26 = arith.constant 1.000000e+00 : f32
    %43 = vector.broadcast %cst_26 : f32 to vector<4x1xf32>
    %44 = arith.maximumf %42, %43 : vector<4x1xf32>
    %45 = tpu.reciprocal %44 {approx = true} : vector<4x1xf32> -> vector<4x1xf32>
    %46 = vector.broadcast %45 : vector<4x1xf32> to vector<4x16xf32>
    %47 = arith.mulf %40, %46 : vector<4x16xf32>
    %cst_27 = arith.constant dense<0.000000e+00> : vector<4x32xf32>
    %48 = tpu.matmul %47, %30, %cst_27 {dimension_numbers = #tpu.dot_dimension_numbers<[1], [0], [0], [1], [0, 0, 1, 1], [], []>} : vector<4x16xf32>, vector<16x32xf32>, vector<4x32xf32> -> vector<4x32xf32>
    %cst_28 = arith.constant 1.000000e+00 : f32
    %49 = vector.broadcast %cst_28 : f32 to vector<1x32xf32>
    %50 = arith.mulf %48, %48 : vector<4x32xf32>
    %cst_29 = arith.constant dense<0.000000e+00> : vector<1x4xf32>
    %51 = tpu.matmul %49, %50, %cst_29 {dimension_numbers = #tpu.dot_dimension_numbers<[1], [1], [0], [0], [0, 0, 1, 0], [], []>} : vector<1x32xf32>, vector<4x32xf32>, vector<1x4xf32> -> vector<1x4xf32>
    %52 = arith.mulf %30, %30 : vector<16x32xf32>
    %cst_30 = arith.constant dense<0.000000e+00> : vector<16xf32>
    %53 = vector.multi_reduction <add>, %52, %cst_30 [1] : vector<16x32xf32> to vector<16xf32>
    %54 = vector.shape_cast %53 : vector<16xf32> to vector<16x1xf32>
    %cst_31 = arith.constant dense<0.000000e+00> : vector<16x4xf32>
    %55 = tpu.matmul %30, %48, %cst_31 {dimension_numbers = #tpu.dot_dimension_numbers<[1], [1], [0], [0], [0, 0, 1, 0], [], []>} : vector<16x32xf32>, vector<4x32xf32>, vector<16x4xf32> -> vector<16x4xf32>
    %cst_32 = arith.constant 2.000000e+00 : f32
    %56 = vector.broadcast %cst_32 : f32 to vector<16x4xf32>
    %57 = arith.mulf %56, %55 : vector<16x4xf32>
    %58 = vector.broadcast %54 : vector<16x1xf32> to vector<16x4xf32>
    %59 = arith.subf %58, %57 : vector<16x4xf32>
    %60 = vector.broadcast %51 : vector<1x4xf32> to vector<16x4xf32>
    %61 = arith.addf %59, %60 : vector<16x4xf32>
    %cst_33 = arith.constant 0.000000e+00 : f32
    %62 = vector.broadcast %cst_33 : f32 to vector<16x4xf32>
    %63 = arith.maximumf %61, %62 : vector<16x4xf32>
    %64 = math.sqrt %63 : vector<16x4xf32>
    %cst_34 = arith.constant -1.000000e+00 : f32
    %65 = vector.broadcast %cst_34 : f32 to vector<16x4xf32>
    %66 = arith.mulf %65, %64 : vector<16x4xf32>
    %67 = math.exp %66 : vector<16x4xf32>
    %cst_35 = arith.constant 1.000000e-10 : f32
    %68 = vector.broadcast %cst_35 : f32 to vector<16x4xf32>
    %69 = arith.addf %67, %68 : vector<16x4xf32>
    %cst_36 = arith.constant dense<0.000000e+00> : vector<16xf32>
    %70 = vector.multi_reduction <add>, %69, %cst_36 [1] : vector<16x4xf32> to vector<16xf32>
    %71 = vector.shape_cast %70 : vector<16xf32> to vector<16x1xf32>
    %72 = tpu.reciprocal %71 {approx = true} : vector<16x1xf32> -> vector<16x1xf32>
    %73 = vector.broadcast %72 : vector<16x1xf32> to vector<16x4xf32>
    %74 = arith.mulf %69, %73 : vector<16x4xf32>
    %c0_37 = arith.constant 0 : index
    %c0_38 = arith.constant 0 : index
    %75 = vector.load %arg9[%c0_37, %c0_38] : memref<32x32xf32, #tpu.memory_space<vmem>>, vector<32x32xf32>
    %cst_39 = arith.constant dense<0.000000e+00> : vector<16x32xf32>
    %76 = tpu.matmul %3, %75, %cst_39 {dimension_numbers = #tpu.dot_dimension_numbers<[1], [1], [0], [0], [0, 0, 1, 0], [], []>} : vector<16x32xf32>, vector<32x32xf32>, vector<16x32xf32> -> vector<16x32xf32>
    %c0_40 = arith.constant 0 : index
    %c0_41 = arith.constant 0 : index
    %77 = vector.load %arg10[%c0_40, %c0_41] : memref<1x32xf32, #tpu.memory_space<vmem>>, vector<1x32xf32>
    %78 = vector.broadcast %77 : vector<1x32xf32> to vector<16x32xf32>
    %79 = arith.addf %76, %78 : vector<16x32xf32>
    %c0_42 = arith.constant 0 : index
    %c0_43 = arith.constant 0 : index
    %80 = vector.load %arg4[%c0_42, %c0_43] : memref<4x8xf32, #tpu.memory_space<vmem>>, vector<4x8xf32>
    %cst_44 = arith.constant 1.000000e+00 : f32
    %81 = vector.broadcast %cst_44 : f32 to vector<1x8xf32>
    %82 = arith.mulf %80, %80 : vector<4x8xf32>
    %cst_45 = arith.constant dense<0.000000e+00> : vector<1x4xf32>
    %83 = tpu.matmul %81, %82, %cst_45 {dimension_numbers = #tpu.dot_dimension_numbers<[1], [1], [0], [0], [0, 0, 1, 0], [], []>} : vector<1x8xf32>, vector<4x8xf32>, vector<1x4xf32> -> vector<1x4xf32>
    %84 = arith.mulf %0, %0 : vector<16x8xf32>
    %cst_46 = arith.constant dense<0.000000e+00> : vector<16xf32>
    %85 = vector.multi_reduction <add>, %84, %cst_46 [1] : vector<16x8xf32> to vector<16xf32>
    %86 = vector.shape_cast %85 : vector<16xf32> to vector<16x1xf32>
    %cst_47 = arith.constant dense<0.000000e+00> : vector<16x4xf32>
    %87 = tpu.matmul %0, %80, %cst_47 {dimension_numbers = #tpu.dot_dimension_numbers<[1], [1], [0], [0], [0, 0, 1, 0], [], []>} : vector<16x8xf32>, vector<4x8xf32>, vector<16x4xf32> -> vector<16x4xf32>
    %cst_48 = arith.constant 2.000000e+00 : f32
    %88 = vector.broadcast %cst_48 : f32 to vector<16x4xf32>
    %89 = arith.mulf %88, %87 : vector<16x4xf32>
    %90 = vector.broadcast %86 : vector<16x1xf32> to vector<16x4xf32>
    %91 = arith.subf %90, %89 : vector<16x4xf32>
    %92 = vector.broadcast %83 : vector<1x4xf32> to vector<16x4xf32>
    %93 = arith.addf %91, %92 : vector<16x4xf32>
    %cst_49 = arith.constant 0.000000e+00 : f32
    %94 = vector.broadcast %cst_49 : f32 to vector<16x4xf32>
    %95 = arith.maximumf %93, %94 : vector<16x4xf32>
    %96 = math.sqrt %95 : vector<16x4xf32>
    %cst_50 = arith.constant -1.000000e+00 : f32
    %97 = vector.broadcast %cst_50 : f32 to vector<16x4xf32>
    %98 = arith.mulf %97, %96 : vector<16x4xf32>
    %99 = math.exp %98 : vector<16x4xf32>
    %cst_51 = arith.constant 1.000000e-10 : f32
    %100 = vector.broadcast %cst_51 : f32 to vector<16x4xf32>
    %101 = arith.addf %99, %100 : vector<16x4xf32>
    %cst_52 = arith.constant dense<0.000000e+00> : vector<16xf32>
    %102 = vector.multi_reduction <add>, %101, %cst_52 [1] : vector<16x4xf32> to vector<16xf32>
    %103 = vector.shape_cast %102 : vector<16xf32> to vector<16x1xf32>
    %104 = tpu.reciprocal %103 {approx = true} : vector<16x1xf32> -> vector<16x1xf32>
    %105 = vector.broadcast %104 : vector<16x1xf32> to vector<16x4xf32>
    %106 = arith.mulf %101, %105 : vector<16x4xf32>
    %c0_53 = arith.constant 0 : index
    %c0_54 = arith.constant 0 : index
    %107 = vector.load %arg5[%c0_53, %c0_54] : memref<4x4xf32, #tpu.memory_space<vmem>>, vector<4x4xf32>
    %108 = math.log %107 : vector<4x4xf32>
    %109 = math.log %106 : vector<16x4xf32>
    %cst_55 = arith.constant dense<0.000000e+00> : vector<16xf32>
    %110 = vector.multi_reduction <add>, %109, %cst_55 [1] : vector<16x4xf32> to vector<16xf32>
    %111 = vector.shape_cast %110 : vector<16xf32> to vector<16x1xf32>
    %112 = vector.broadcast %111 : vector<16x1xf32> to vector<16x4xf32>
    %113 = arith.mulf %74, %112 : vector<16x4xf32>
    %cst_56 = arith.constant dense<0.000000e+00> : vector<16x4xf32>
    %114 = tpu.matmul %39, %108, %cst_56 {dimension_numbers = #tpu.dot_dimension_numbers<[1], [0], [0], [1], [0, 0, 1, 1], [], []>} : vector<16x4xf32>, vector<4x4xf32>, vector<16x4xf32> -> vector<16x4xf32>
    %115 = arith.subf %113, %114 : vector<16x4xf32>
    %cst_57 = arith.constant 9.99999996E-13 : f32
    %116 = vector.broadcast %cst_57 : f32 to vector<16x4xf32>
    %117 = arith.maximumf %64, %116 : vector<16x4xf32>
    %118 = tpu.reciprocal %117 {approx = true} : vector<16x4xf32> -> vector<16x4xf32>
    %119 = arith.mulf %115, %74 : vector<16x4xf32>
    %120 = arith.mulf %74, %118 : vector<16x4xf32>
    %121 = arith.mulf %119, %118 : vector<16x4xf32>
    %cst_58 = arith.constant dense<0.000000e+00> : vector<16xf32>
    %122 = vector.multi_reduction <add>, %120, %cst_58 [1] : vector<16x4xf32> to vector<16xf32>
    %123 = vector.shape_cast %122 : vector<16xf32> to vector<16x1xf32>
    %124 = vector.broadcast %123 : vector<16x1xf32> to vector<16x32xf32>
    %125 = arith.mulf %124, %30 : vector<16x32xf32>
    %cst_59 = arith.constant dense<0.000000e+00> : vector<16x32xf32>
    %126 = tpu.matmul %120, %48, %cst_59 {dimension_numbers = #tpu.dot_dimension_numbers<[1], [0], [0], [1], [0, 0, 1, 1], [], []>} : vector<16x4xf32>, vector<4x32xf32>, vector<16x32xf32> -> vector<16x32xf32>
    %127 = arith.subf %125, %126 : vector<16x32xf32>
    %cst_60 = arith.constant dense<0.000000e+00> : vector<16xf32>
    %128 = vector.multi_reduction <add>, %121, %cst_60 [1] : vector<16x4xf32> to vector<16xf32>
    %129 = vector.shape_cast %128 : vector<16xf32> to vector<16x1xf32>
    %130 = vector.broadcast %129 : vector<16x1xf32> to vector<16x32xf32>
    %131 = arith.mulf %130, %30 : vector<16x32xf32>
    %cst_61 = arith.constant dense<0.000000e+00> : vector<16x32xf32>
    %132 = tpu.matmul %121, %48, %cst_61 {dimension_numbers = #tpu.dot_dimension_numbers<[1], [0], [0], [1], [0, 0, 1, 1], [], []>} : vector<16x4xf32>, vector<4x32xf32>, vector<16x32xf32> -> vector<16x32xf32>
    %133 = arith.subf %131, %132 : vector<16x32xf32>
    %cst_62 = arith.constant dense<0.000000e+00> : vector<16xf32>
    %134 = vector.multi_reduction <add>, %119, %cst_62 [1] : vector<16x4xf32> to vector<16xf32>
    %135 = vector.shape_cast %134 : vector<16xf32> to vector<16x1xf32>
    %136 = vector.broadcast %135 : vector<16x1xf32> to vector<16x32xf32>
    %137 = arith.mulf %136, %127 : vector<16x32xf32>
    %138 = arith.subf %137, %133 : vector<16x32xf32>
    %cst_63 = arith.constant 1.000000e+00 : f32
    %139 = vector.broadcast %cst_63 : f32 to vector<16x32xf32>
    %140 = arith.mulf %139, %138 : vector<16x32xf32>
    %cst_64 = arith.constant dense<0.000000e+00> : vector<16x16xf32>
    %141 = tpu.matmul %140, %79, %cst_64 {dimension_numbers = #tpu.dot_dimension_numbers<[1], [1], [0], [0], [0, 0, 1, 0], [], []>} : vector<16x32xf32>, vector<16x32xf32>, vector<16x16xf32> -> vector<16x16xf32>
    %cst_65 = arith.constant 6.250000e-02 : f32
    %142 = vector.broadcast %cst_65 : f32 to vector<16x16xf32>
    %143 = arith.mulf %141, %142 : vector<16x16xf32>
    %144 = arith.subf %29, %143 : vector<16x16xf32>
    %145 = arith.mulf %144, %144 : vector<16x16xf32>
    %cst_66 = arith.constant dense<0.000000e+00> : vector<16xf32>
    %146 = vector.multi_reduction <add>, %145, %cst_66 [1] : vector<16x16xf32> to vector<16xf32>
    %147 = vector.shape_cast %146 : vector<16xf32> to vector<16x1xf32>
    %cst_67 = arith.constant 1.000000e-24 : f32
    %148 = vector.broadcast %cst_67 : f32 to vector<16x1xf32>
    %149 = arith.maximumf %147, %148 : vector<16x1xf32>
    %150 = math.rsqrt %149 : vector<16x1xf32>
    %151 = vector.broadcast %150 : vector<16x1xf32> to vector<16x16xf32>
    %152 = arith.mulf %144, %151 : vector<16x16xf32>
    %c0_68 = arith.constant 0 : index
    %c0_69 = arith.constant 0 : index
    %153 = vector.load %arg11[%c0_68, %c0_69] : memref<32x8xf32, #tpu.memory_space<vmem>>, vector<32x8xf32>
    %cst_70 = arith.constant dense<0.000000e+00> : vector<16x8xf32>
    %154 = tpu.matmul %38, %153, %cst_70 {dimension_numbers = #tpu.dot_dimension_numbers<[1], [0], [0], [1], [0, 0, 1, 1], [], []>} : vector<16x32xf32>, vector<32x8xf32>, vector<16x8xf32> -> vector<16x8xf32>
    %cst_71 = arith.constant dense<0.000000e+00> : vector<16x8xf32>
    %155 = tpu.matmul %1, %154, %cst_71 {dimension_numbers = #tpu.dot_dimension_numbers<[1], [0], [0], [1], [0, 0, 1, 1], [], []>} : vector<16x16xf32>, vector<16x8xf32>, vector<16x8xf32> -> vector<16x8xf32>
    %cst_72 = arith.constant 0.000000e+00 : f32
    %156 = vector.broadcast %cst_72 : f32 to vector<16x8xf32>
    %157 = arith.maximumf %155, %156 : vector<16x8xf32>
    %cst_73 = arith.constant dense<0.000000e+00> : vector<16x8xf32>
    %158 = tpu.matmul %152, %157, %cst_73 {dimension_numbers = #tpu.dot_dimension_numbers<[1], [0], [0], [1], [0, 0, 1, 1], [], []>} : vector<16x16xf32>, vector<16x8xf32>, vector<16x8xf32> -> vector<16x8xf32>
    %159 = tpu.iota {dimensions = array<i32: 0>} : vector<8x128xi32>
    %160 = tpu.iota {dimensions = array<i32: 1>} : vector<8x128xi32>
    %c0_i32 = arith.constant 0 : i32
    %161 = vector.broadcast %c0_i32 : i32 to vector<8x128xi32>
    %162 = arith.addi %159, %161 : vector<8x128xi32>
    %163 = arith.cmpi eq, %160, %162 : vector<8x128xi32>
    %164 = arith.extui %163 : vector<8x128xi1> to vector<8x128xi32>
    %165 = arith.sitofp %164 : vector<8x128xi32> to vector<8x128xf32>
    %cst_74 = arith.constant dense<0.000000e+00> : vector<16x128xf32>
    %166 = tpu.matmul %158, %165, %cst_74 {dimension_numbers = #tpu.dot_dimension_numbers<[1], [0], [0], [1], [0, 0, 1, 1], [], []>} : vector<16x8xf32>, vector<8x128xf32>, vector<16x128xf32> -> vector<16x128xf32>
    %167 = tpu.iota {dimensions = array<i32: 0>} : vector<32x128xi32>
    %168 = tpu.iota {dimensions = array<i32: 1>} : vector<32x128xi32>
    %c8_i32 = arith.constant 8 : i32
    %169 = vector.broadcast %c8_i32 : i32 to vector<32x128xi32>
    %170 = arith.addi %167, %169 : vector<32x128xi32>
    %171 = arith.cmpi eq, %168, %170 : vector<32x128xi32>
    %172 = arith.extui %171 : vector<32x128xi1> to vector<32x128xi32>
    %173 = arith.sitofp %172 : vector<32x128xi32> to vector<32x128xf32>
    %cst_75 = arith.constant dense<0.000000e+00> : vector<16x128xf32>
    %174 = tpu.matmul %30, %173, %cst_75 {dimension_numbers = #tpu.dot_dimension_numbers<[1], [0], [0], [1], [0, 0, 1, 1], [], []>} : vector<16x32xf32>, vector<32x128xf32>, vector<16x128xf32> -> vector<16x128xf32>
    %175 = arith.addf %166, %174 : vector<16x128xf32>
    %176 = tpu.iota {dimensions = array<i32: 0>} : vector<4x128xi32>
    %177 = tpu.iota {dimensions = array<i32: 1>} : vector<4x128xi32>
    %c40_i32 = arith.constant 40 : i32
    %178 = vector.broadcast %c40_i32 : i32 to vector<4x128xi32>
    %179 = arith.addi %176, %178 : vector<4x128xi32>
    %180 = arith.cmpi eq, %177, %179 : vector<4x128xi32>
    %181 = arith.extui %180 : vector<4x128xi1> to vector<4x128xi32>
    %182 = arith.sitofp %181 : vector<4x128xi32> to vector<4x128xf32>
    %cst_76 = arith.constant dense<0.000000e+00> : vector<16x128xf32>
    %183 = tpu.matmul %74, %182, %cst_76 {dimension_numbers = #tpu.dot_dimension_numbers<[1], [0], [0], [1], [0, 0, 1, 1], [], []>} : vector<16x4xf32>, vector<4x128xf32>, vector<16x128xf32> -> vector<16x128xf32>
    %184 = arith.addf %175, %183 : vector<16x128xf32>
    %c0_77 = arith.constant 0 : index
    %c0_78 = arith.constant 0 : index
    %185 = vector.load %arg12[%c0_77, %c0_78] : memref<16x128xf32, #tpu.memory_space<vmem>>, vector<16x128xf32>
    tpu.vector_store %arg12[%c0_77, %c0_78], %184 {strides = array<i32>} : memref<16x128xf32, #tpu.memory_space<vmem>>, vector<16x128xf32>,
    return
  }
}

</mosaic_0001>

<bundles_post_ra>
// kernel: tpu_custom_call.1
= control target key start
LH: loop header
LB: loop body
LE: loop exit
PB: predicated region body
PF: predicated region fallthrough
CT: control target
= control target key end

     0   :  { %vm47_vm0 = vcmask 64512   ;;  %s2709_s0 = inlined_call_operand.vmem [shape: f32[16,8], index: 0, kind: input, shape index: {}]   ;;  %s2710_s1 = inlined_call_operand.vmem [shape: f32[16,16], index: 1, kind: input, shape index: {}]   ;;  %s2711_s2 = inlined_call_operand.vmem [shape: f32[16,4], index: 2, kind: input, shape index: {}]   ;;  %s2712_s3 = inlined_call_operand.vmem [shape: f32[4,16], index: 3, kind: input, shape index: {}]   ;;  %s2713_s4 = inlined_call_operand.vmem [shape: f32[4,8], index: 4, kind: input, shape index: {}]   ;;  %s2714_s5 = inlined_call_operand.vmem [shape: f32[4,4], index: 5, kind: input, shape index: {}]   ;;  %s2715_s6 = inlined_call_operand.vmem [shape: f32[8,32], index: 6, kind: input, shape index: {}]   ;;  %s2716_s7 = inlined_call_operand.vmem [shape: f32[32,1], index: 7, kind: input, shape index: {}]   ;;  %s2717_s8 = inlined_call_operand.vmem [shape: f32[1,32], index: 8, kind: input, shape index: {}]   ;;  %s2718_s9 = inlined_call_operand.vmem [shape: f32[32,32], index: 9, kind: input, shape index: {}]   ;;  %s2719_s10 = inlined_call_operand.vmem [shape: f32[1,32], index: 10, kind: input, shape index: {}]   ;;  %s2720_s11 = inlined_call_operand.vmem [shape: f32[32,8], index: 11, kind: input, shape index: {}]   ;;  %s2721_s12 = inlined_call_operand.hbm [shape: f32[16,128], index: 12, kind: output, shape index: {}]  }
   0x1   :  { %v46_v0 = vld [vmem:[%s2715_s6] sm:$0xff]  ;;  %v2423_v2 = vld [vmem:[%s2709_s0 + $0x8] sm:$0xff]  ;;  %v132_v3 = vld [vmem:[%s2716_s7 + $0x18] sm:$0xff] }
   0x2   :  { %v2418_v1 = vld [vmem:[%s2709_s0] sm:$0xff]  ;;  %2122 = vmatprep.subr.mxu0 %v46_v0  ;;  %v131_v4 = vld [vmem:[%s2716_s7 + $0x10] sm:$0xff]  ;;  %2127 = vmatprep.subr.mxu1 %v132_v3 }
   0x3   :  { %2124 = vmatprep.mubr.msk.f32.mxu0 %vm47_vm0, %v2418_v1  ;;  %2123 = vmatpush3.msra.mxu0 %v46_v0 }
   0x4   :  { %17 = vsyncpa [#allocation3], 0  ;;  %2125 = vmatmul.mubr.msk.f32.vlgmr.msra.gmra.mxu0 %vm47_vm0, %v2423_v2  ;;  %2128 = vmatpush3.msra.mxu1 %v132_v3  ;;  %v130_v5 = vld [vmem:[%s2716_s7 + $0x8] sm:$0xff]  ;;  %v129_v6 = vld [vmem:[%s2716_s7] sm:$0xff]  ;;  %v2340_v7 = vmov 0.0   ;;  %vm2341_vm1 = vmmov 0   ;;  %v299_v16 = vlaneseq  ;;  %v903_v46 = vmul.f32 %v2418_v1, %v2418_v1 }
   0x5   :  { %2129 = vmatprep.subr.mxu1 %v131_v4  ;;  %2138 = vmatprep.subr.mxu0 %v2340_v7  ;;  %vm133_vm2 = vcmask 261120   ;;  %v215_v10 = vld [vmem:[%s2717_s8] sm:$0x1]  ;;  %v2342_v11 = vmov 0   ;;  %vm315_vm5 = vcmask 130048   ;;  %v2485_v25 = vld [vmem:[%s2710_s1 + $0x8] sm:$0xff]  ;;  %v904_v54 = vmul.f32 %v2423_v2, %v2423_v2 }
   0x6   :  { %2130 = vmatpush3.msra.mxu1 %v131_v4  ;;  %2142 = vmatprep.mubr.msk.f32.mxu0 %vm2341_vm1, %v2340_v7  ;;  %v2470_v17 = vshrl.u32 %v299_v16, 7  ;;  %v2479_v21 = vld [vmem:[%s2710_s1] sm:$0xff]  ;;  %vm312_vm7 = vcmp.gt.f32.partialorder %v2485_v25, 0.0  ;;  %vm434_vm8 = vcmask 125952   ;;  %v905_v47 = vsel %vm47_vm0, %v903_v46, 0.0 }
   0x7   :  { %2131 = vmatprep.subr.mxu1 %v130_v5  ;;  %2265 = vset.pattern.permute.xlu0 %v2342_v11  ;;  %vm311_vm4 = vcmp.gt.f32.partialorder %v2479_v21, 0.0  ;;  %v433_v44 = vld [vmem:[%s2712_s3] sm:$0xf]  ;;  %v908_v55 = vsel %vm47_vm0, %v904_v54, 0.0  ;;  %v731_v11 = vld [vmem:[%s2718_s9 + $0x18] sm:$0xff]  ;;  %vm1054_vm9 = vcmask 1043456  }
   0x8   :  { %2132 = vmatpush3.msra.mxu1 %v130_v5  ;;  %v2473_v18 = vsub.s32 0, %v2470_v17  ;;  %v435_v45 = vsel %vm434_vm8, %v433_v44, 0.0  ;;  %v1033_v4 = vld [vmem:[%s2714_s5] sm:$0xf]  ;;  %vm717_vm10 = vcmask 31744  }
   0x9   :  { %2133 = vmatprep.subr.mxu1 %v129_v6  ;;  %v826_v5 = vld [vmem:[%s2713_s4] sm:$0xf] }
   0xa   :  { %2134 = vmatpush3.msra.mxu1 %v129_v6  ;;  %v2595_v54 = vld [vmem:[%s2719_s10] ss:$0 sm:$0xff] }
  0xc4   :  { %v2444_v8 = vpop.f32.mrf.mxu0 }
  0xc5   :  { %2139 = vmatpush3.xpose.msk.msra.mxu0 %vm133_vm2, %v2444_v8  ;;  %2145 = vmatprep.subr.mxu1 %v2444_v8 }
  0xc6   :  { %v2449_v9 = vpop.f32.mrf.mxu0  ;;  %2140 = vmatprep.subr.mxu0 %v2340_v7 }
  0xc7   :  { %2135 = vmatprep.mubr.msk.f32.mxu1 %vm133_vm2, %v2449_v9 }
  0xc8   :  { %2136 = vmatmul.mubr.msk.f32.vlgmr.msra.gmra.mxu1 %vm133_vm2, %v2444_v8 }
  0xc9   :  { %2146 = vmatpush3.msra.mxu1 %v2444_v8  ;;  %2141 = vmatpush3.xpose.msk.msra.mxu0 %vm133_vm2, %v2449_v9 }
  0xca   :  { %2147 = vmatprep.subr.mxu1 %v2449_v9  ;;  %2152 = vmatprep.subr.mxu0 %v2340_v7 }
  0xcb   :  { %2148 = vmatpush3.msra.mxu1 %v2449_v9 }
  0xcc   :  { %2143 = vmatmul.mubr.msk.f32.vlgmr.msra.gmra.mxu0 %vm133_vm2, %v215_v10  ;;  %2159 = vmatprep.subr.mxu1 %v2340_v7 }
  0xcd   :  { %2156 = vmatprep.mubr.msk.f32.mxu0 %vm2341_vm1, %v2340_v7 }
 0x188   :  { %v2137_v12 = vpop.f32.mrf.mxu1 }
 0x18a   :  { %v206_v13 = vpop.f32.mrf.mxu1 }
 0x18b   :  { %291 = vperm.xlu0 %2265, %v206_v13   ;;  %v827_v13 = vmul.f32 %v826_v5, %v826_v5 }
 0x18c   :  { %v285_v14 = vpop.f32.mrf.mxu0 }
 0x18d   :  { %v302_v19 = vrot.slane %v285_v14, %v2473_v18 }
 0x18e   :  { %v2144_v15 = vpop.f32.mrf.mxu0 }
 0x18f   :  { %296 = vperm.xlu0 %2265, %v2137_v12   ;;  %v2343_v15 = vmov 1.0  }
 0x206   :  { %v292_v20 = vpop.permute.xlu0 %291 }
 0x207   :  { %v303_v22 = vadd.f32 %v302_v19, %v292_v20 }
 0x209   :  { %v307_v23 = vmul.f32 0.2, %v303_v22  ;;  %vm305_vm3 = vcmp.gt.f32.partialorder %v303_v22, 0.0 }
 0x20a   :  { %v297_v24 = vpop.permute.xlu0 %296 }
 0x20b   :  { %v304_v26 = vadd.f32 %v302_v19, %v297_v24  ;;  %v309_v27 = vsel %vm305_vm3, %v303_v22, %v307_v23  ;;  %v730_v19 = vld [vmem:[%s2718_s9 + $0x10] sm:$0xff]  ;;  %v729_v22 = vld [vmem:[%s2718_s9 + $0x8] sm:$0xff]  ;;  %v728_v23 = vld [vmem:[%s2718_s9] sm:$0xff] }
 0x20c   :  { %v313_v28 = vsel %vm311_vm4, %v309_v27, -9e+15 }
 0x20d   :  { %v308_v29 = vmul.f32 0.2, %v304_v26  ;;  %v316_v30 = vsel %vm315_vm5, %v313_v28, -inf  ;;  %vm306_vm6 = vcmp.gt.f32.partialorder %v304_v26, 0.0 }
 0x20e   :  { %317 = vmax.xlane.f32.xlu1 %v316_v30 }
 0x20f   :  { %v310_v31 = vsel %vm306_vm6, %v304_v26, %v308_v29 }
 0x210   :  { %v314_v32 = vsel %vm312_vm7, %v310_v31, -9e+15 }
 0x211   :  { %v319_v33 = vsel %vm315_vm5, %v314_v32, -inf }
 0x212   :  { %320 = vmax.xlane.f32.xlu1 %v319_v33 }
 0x297   :  { %v318_v34 = vpop.xlane.xlu1 %317 }
 0x298   :  { %v322_v35 = vsub.f32 %v313_v28, %v318_v34 }
 0x29a   :  { %v324_v36 = vmul.f32 1.442695, %v322_v35 }
 0x29b   :  { %v321_v37 = vpop.xlane.xlu1 %320 }
 0x29c   :  { %2266 = vpow2.f32 %v324_v36  ;;  %v323_v38 = vsub.f32 %v314_v32, %v321_v37 }
 0x29e   :  { %v326_v39 = vmul.f32 1.442695, %v323_v38 }
 0x2a0   :  { %2268 = vpow2.f32 %v326_v39 }
 0x2a9   :  { %v2267_v40 = vpop.eup %2266 }
 0x2aa   :  { %v328_v41 = vsel %vm315_vm5, %v2267_v40, 0.0 }
 0x2ab   :  { %329 = vadd.xlane.f32.xlu0 %v328_v41 }
 0x2ad   :  { %v2269_v42 = vpop.eup %2268 }
 0x2ae   :  { %v331_v43 = vsel %vm315_vm5, %v2269_v42, 0.0 }
 0x2af   :  { %332 = vadd.xlane.f32.xlu1 %v331_v43 }
 0x2b3   :  { %436 = vadd.xlane.f32.xlu1 %v435_v45 }
 0x2b7   :  { %906 = vadd.xlane.f32.xlu1 %v905_v47 }
 0x2bb   :  { %909 = vadd.xlane.f32.xlu1 %v908_v55 }
 0x334   :  { %v330_v48 = vpop.xlane.xlu0 %329 }
 0x335   :  { %2270 = vrcp.f32 %v330_v48 }
 0x338   :  { %v333_v49 = vpop.xlane.xlu1 %332 }
 0x339   :  { %2272 = vrcp.f32 %v333_v49 }
 0x33c   :  { %v437_v56 = vpop.xlane.xlu1 %436 }
 0x33d   :  { %v438_v57 = vmax.f32 %v437_v56, 1.0 }
 0x33f   :  { %2274 = vrcp.f32 %v438_v57 }
 0x340   :  { %2276 = vlog2.f32 %v1033_v4 }
 0x342   :  { %v2271_v50 = vpop.eup %2270 }
 0x343   :  { %v2498_v51 = vmul.f32 %v2271_v50, %v2267_v40 }
 0x345   :  { %2149 = vmatprep.mubr.msk.f32.mxu1 %vm315_vm5, %v2498_v51 }
 0x346   :  { %v2273_v52 = vpop.eup %2272 }
 0x347   :  { %v2502_v53 = vmul.f32 %v2273_v52, %v2269_v42 }
 0x349   :  { %2150 = vmatmul.mubr.msk.f32.vlgmr.msra.gmra.mxu1 %vm315_vm5, %v2502_v53 }
 0x34a   :  { %2161 = vmatprep.mubr.msk.f32.mxu1 %vm2341_vm1, %v2340_v7 }
 0x34c   :  { %v2275_v58 = vpop.eup %2274 }
 0x34d   :  { %v440_v60 = vmul.f32 %v2275_v58, %v433_v44  ;;  %v2277_v14 = vpop.eup %2276 }
 0x34e   :  { %v1035_v20 = vmul.f32 0.6931472, %v2277_v14 }
 0x409   :  { %v2511_v59 = vpop.f32.mrf.mxu1 }
 0x40a   :  { %2153 = vmatpush3.msra.mxu0 %v2511_v59  ;;  %v592_v0 = vmul.f32 %v2511_v59, %v2511_v59  ;;  %vm420_vm7 = vcmp.gt.f32.partialorder %v2511_v59, 0.0 }
 0x40b   :  { %v2514_v61 = vpop.f32.mrf.mxu1  ;;  %2154 = vmatprep.subr.mxu0 %v2340_v7 }
 0x40c   :  { %2155 = vmatpush3.msra.mxu0 %v2514_v61  ;;  %v591_v62 = vmul.f32 %v2514_v61, %v2514_v61  ;;  %v596_v3 = vsel %vm133_vm2, %v592_v0, 0.0  ;;  %vm419_vm6 = vcmp.gt.f32.partialorder %v2514_v61, 0.0 }
 0x40d   :  { %2157 = vmatmul.mubr.msk.f32.vlgmr.msra.gmra.mxu0 %vm315_vm5, %v440_v60 }
 0x40e   :  { %2166 = vmatprep.mubr.msk.f32.mxu0 %vm133_vm2, %v2514_v61  ;;  %v593_v63 = vsel %vm133_vm2, %v591_v62, 0.0 }
 0x40f   :  { %594 = vadd.xlane.f32.xlu1 %v593_v63 }
 0x413   :  { %597 = vadd.xlane.f32.xlu1 %v596_v3 }
 0x4cd   :  { %v510_v6 = vpop.f32.mrf.mxu0 }
 0x4ce   :  { %2164 = vmatprep.subr.msk.mxu0 %vm133_vm2, %v510_v6  ;;  %v514_v10 = vmul.f32 %v510_v6, %v510_v6 }
 0x4cf   :  { %v2158_v12 = vpop.f32.mrf.mxu0  ;;  %2165 = vmatpush3.xpose.msk.msra.mxu0 %vm133_vm2, %v510_v6 }
 0x4d0   :  { %2160 = vmatpush3.xpose.msk.msra.mxu1 %vm133_vm2, %v514_v10  ;;  %2180 = vmatprep.subr.mxu0 %v2340_v7 }
 0x4d1   :  { %2169 = vmatprep.subr.msk.mxu1 %vm133_vm2, %v731_v11 }
 0x4d2   :  { %2167 = vmatmul.mubr.msk.f32.vlgmr.msra.gmra.mxu0 %vm133_vm2, %v2511_v59 }
 0x4d3   :  { %2162 = vmatmul.mubr.msk.f32.vlgmr.msra.gmra.mxu1 %vm133_vm2, %v2343_v15  ;;  %2181 = vmatpush3.xpose.msk.msra.mxu0 %vm47_vm0, %v827_v13 }
 0x4d4   :  { %2170 = vmatpush3.xpose.msk.msra.mxu1 %vm133_vm2, %v731_v11  ;;  %2177 = vmatprep.mubr.msk.f32.mxu1 %vm133_vm2, %v2449_v9  ;;  %v431_v9 = vld [vmem:[%s2711_s2] sm:$0xff] }
 0x4d5   :  { %2182 = vmatprep.mubr.msk.f32.mxu0 %vm2341_vm1, %v2340_v7  ;;  %2185 = vmatprep.subr.msk.mxu0 %vm47_vm0, %v826_v5 }
 0x4d6   :  { %2183 = vmatmul.mubr.msk.f32.vlgmr.msra.gmra.mxu0 %vm47_vm0, %v2343_v15  ;;  %2171 = vmatprep.subr.msk.mxu1 %vm133_vm2, %v730_v19 }
 0x4d7   :  { %2186 = vmatpush3.xpose.msk.msra.mxu0 %vm47_vm0, %v826_v5  ;;  %2187 = vmatprep.mubr.msk.f32.mxu0 %vm47_vm0, %v2418_v1  ;;  %v432_v1 = vld [vmem:[%s2711_s2 + $0x8] sm:$0xff] }
 0x4d8   :  { %2172 = vmatpush3.xpose.msk.msra.mxu1 %vm133_vm2, %v730_v19  ;;  %2190 = vmatprep.subr.msk.mxu0 %vm1054_vm9, %v1035_v20 }
 0x4d9   :  { %2173 = vmatprep.subr.msk.mxu1 %vm133_vm2, %v729_v22 }
 0x4da   :  { %2188 = vmatmul.mubr.msk.f32.vlgmr.msra.gmra.mxu0 %vm47_vm0, %v2423_v2  ;;  %v907_v2 = vpop.xlane.xlu1 %906 }
 0x4db   :  { %2191 = vmatpush3.msk.msra.mxu0 %vm1054_vm9, %v1035_v20  ;;  %2192 = vmatprep.mubr.msk.f32.mxu0 %vm717_vm10, %v431_v9 }
 0x4dc   :  { %2174 = vmatpush3.xpose.msk.msra.mxu1 %vm133_vm2, %v729_v22  ;;  %2195 = vmatprep.subr.msk.mxu0 %vm1054_vm9, %v510_v6 }
 0x4dd   :  { %2175 = vmatprep.subr.msk.mxu1 %vm133_vm2, %v728_v23 }
 0x4de   :  { %2193 = vmatmul.mubr.msk.f32.vlgmr.msra.gmra.mxu0 %vm717_vm10, %v432_v1  ;;  %v910_v24 = vpop.xlane.xlu1 %909 }
 0x4df   :  { %2196 = vmatpush3.msk.msra.mxu0 %vm1054_vm9, %v510_v6 }
 0x4e0   :  { %2176 = vmatpush3.xpose.msk.msra.mxu1 %vm133_vm2, %v728_v23 }
 0x4e1   :  { %2200 = vmatprep.subr.msk.mxu1 %vm1054_vm9, %v510_v6 }
 0x4e2   :  { %v595_v26 = vpop.xlane.xlu1 %594 }
 0x4e3   :  { %2178 = vmatmul.mubr.msk.f32.vlgmr.msra.gmra.mxu1 %vm133_vm2, %v2444_v8 }
 0x4e4   :  { %2201 = vmatpush3.msk.msra.mxu1 %vm1054_vm9, %v510_v6 }
 0x4e6   :  { %v598_v30 = vpop.xlane.xlu1 %597 }
 0x592   :  { %v2168_v27 = vpop.f32.mrf.mxu0 }
 0x593   :  { %v684_v28 = vmul.f32 2.0, %v2168_v27  ;;  %v587_v29 = vpop.f32.mrf.mxu1 }
 0x594   :  { %v690_v31 = vrot.slane %v587_v29, %v2473_v18  ;;  %v674_v32 = vpop.f32.mrf.mxu0 }
 0x595   :  { %v686_v33 = vsub.f32 %v598_v30, %v684_v28  ;;  %v683_v34 = vmul.f32 2.0, %v674_v32  ;;  %v2163_v35 = vpop.f32.mrf.mxu1 }
 0x596   :  { %v899_v36 = vpop.f32.mrf.mxu0 }
 0x597   :  { %v692_v37 = vadd.f32 %v690_v31, %v686_v33  ;;  %v685_v38 = vsub.f32 %v595_v26, %v683_v34  ;;  %v996_v45 = vrot.slane %v899_v36, %v2473_v18 }
 0x598   :  { %v2184_v39 = vpop.f32.mrf.mxu0 }
 0x599   :  { %v694_v8 = vmax.f32 %v692_v37, 0.0  ;;  %v691_v40 = vadd.f32 %v690_v31, %v685_v38 }
 0x59a   :  { %v2189_v41 = vpop.f32.mrf.mxu0 }
 0x59b   :  { %v693_v42 = vmax.f32 %v691_v40, 0.0  ;;  %v990_v43 = vmul.f32 2.0, %v2189_v41  ;;  %2278 = vrsqrt.f32 %v694_v8  ;;  %vm704_vm13 = vcmp.eq.f32.partialorder %v694_v8, inf }
 0x59c   :  { %v980_v44 = vpop.f32.mrf.mxu0  ;;  %vm706_vm15 = vcmp.eq.f32.partialorder %v694_v8, 0.0  ;;  %v707_v14 = vand.u32 2147483648, %v694_v8 }
 0x59d   :  { %2280 = vrsqrt.f32 %v693_v42  ;;  %v992_v46 = vsub.f32 %v910_v24, %v990_v43  ;;  %v989_v47 = vmul.f32 2.0, %v980_v44  ;;  %vm697_vm11 = vcmp.eq.f32.partialorder %v693_v42, inf }
 0x59e   :  { %v700_v62 = vand.u32 2147483648, %v693_v42  ;;  %vm699_vm12 = vcmp.eq.f32.partialorder %v693_v42, 0.0 }
 0x59f   :  { %v998_v48 = vadd.f32 %v996_v45, %v992_v46  ;;  %v991_v49 = vsub.f32 %v907_v2, %v989_v47 }
 0x5a1   :  { %v1000_v50 = vmax.f32 %v998_v48, 0.0  ;;  %v997_v52 = vadd.f32 %v996_v45, %v991_v49 }
 0x5a3   :  { %2282 = vrsqrt.f32 %v1000_v50  ;;  %v999_v55 = vmax.f32 %v997_v52, 0.0  ;;  %v2179_v56 = vpop.f32.mrf.mxu1  ;;  %vm1010_vm14 = vcmp.eq.f32.partialorder %v1000_v50, inf  ;;  %v1013_v13 = vand.u32 2147483648, %v1000_v50 }
 0x5a4   :  { %v2598_v57 = vadd.f32 %v2179_v56, %v2595_v54  ;;  %vm1012_vm1 = vcmp.eq.f32.partialorder %v1000_v50, 0.0 }
 0x5a5   :  { %2284 = vrsqrt.f32 %v999_v55  ;;  %vm1003_vm3 = vcmp.eq.f32.partialorder %v999_v55, inf  ;;  %v1006_v22 = vand.u32 2147483648, %v999_v55  ;;  %vm1005_vm4 = vcmp.eq.f32.partialorder %v999_v55, 0.0 }
 0x5a6   :  { %2205 = vmatprep.subr.msk.mxu0 %vm133_vm2, %v2598_v57 }
 0x5a8   :  { %v2279_v18 = vpop.eup %2278 }
 0x5a9   :  { %v703_v0 = vmul.f32 %v2279_v18, %v694_v8 }
 0x5aa   :  { %v2281_v58 = vpop.eup %2280 }
 0x5ab   :  { %v696_v60 = vmul.f32 %v2281_v58, %v693_v42  ;;  %v705_v11 = vsel %vm704_vm13, %v694_v8, %v703_v0  ;;  %v817_v0 = vpop.f32.mrf.mxu1 }
 0x5ac   :  { %v708_v23 = vsel %vm706_vm15, %v707_v14, %v705_v11 }
 0x5ad   :  { %v698_v63 = vsel %vm697_vm11, %v693_v42, %v696_v60  ;;  %v710_v28 = vmul.f32 -1.0, %v708_v23  ;;  %v1136_v47 = vmax.f32 %v708_v23, 1e-12 }
 0x5ae   :  { %v701_v3 = vsel %vm699_vm12, %v700_v62, %v698_v63 }
 0x5af   :  { %v709_v4 = vmul.f32 -1.0, %v701_v3  ;;  %v713_v30 = vmul.f32 1.442695, %v710_v28  ;;  %v1135_v42 = vmax.f32 %v701_v3, 1e-12 }
 0x5b0   :  { %v2283_v5 = vpop.eup %2282 }
 0x5b1   :  { %v711_v6 = vmul.f32 1.442695, %v709_v4  ;;  %v1009_v10 = vmul.f32 %v2283_v5, %v1000_v50  ;;  %v818_v4 = vadd.f32 %v2595_v54, %v817_v0 }
 0x5b2   :  { %v2285_v12 = vpop.eup %2284 }
 0x5b3   :  { %2286 = vpow2.f32 %v711_v6  ;;  %v1002_v19 = vmul.f32 %v2285_v12, %v999_v55  ;;  %v1011_v20 = vsel %vm1010_vm14, %v1000_v50, %v1009_v10 }
 0x5b4   :  { %v1014_v9 = vsel %vm1012_vm1, %v1013_v13, %v1011_v20 }
 0x5b5   :  { %v1004_v1 = vsel %vm1003_vm3, %v999_v55, %v1002_v19  ;;  %v1016_v2 = vmul.f32 -1.0, %v1014_v9  ;;  %v421_v19 = vmin.f32 %v2514_v61, 0.0  ;;  %v2194_v9 = vpop.f32.mrf.mxu0 }
 0x5b6   :  { %v1007_v24 = vsel %vm1005_vm4, %v1006_v22, %v1004_v1  ;;  %v422_v22 = vmin.f32 %v2511_v59, 0.0 }
 0x5b7   :  { %v1015_v26 = vmul.f32 -1.0, %v1007_v24  ;;  %v1019_v27 = vmul.f32 1.442695, %v1016_v2  ;;  %v423_v20 = vmul.f32 1.442695, %v421_v19  ;;  %v1124_v2 = vpop.f32.mrf.mxu0 }
 0x5b8   :  { %v425_v23 = vmul.f32 1.442695, %v422_v22 }
 0x5b9   :  { %v1017_v29 = vmul.f32 1.442695, %v1015_v26  ;;  %2288 = vpow2.f32 %v1019_v27 }
 0x5bb   :  { %2290 = vpow2.f32 %v1017_v29 }
 0x5bc   :  { %2292 = vpow2.f32 %v713_v30 }
 0x5c0   :  { %v2287_v31 = vpop.eup %2286 }
 0x5c1   :  { %v715_v32 = vadd.f32 1e-10, %v2287_v31 }
 0x5c3   :  { %v718_v33 = vsel %vm717_vm10, %v715_v32, 0.0 }
 0x5c4   :  { %719 = vadd.xlane.f32.xlu0 %v718_v33 }
 0x5c6   :  { %v2289_v34 = vpop.eup %2288 }
 0x5c7   :  { %v1022_v38 = vadd.f32 1e-10, %v2289_v34 }
 0x5c8   :  { %v2291_v35 = vpop.eup %2290 }
 0x5c9   :  { %v1021_v36 = vadd.f32 1e-10, %v2291_v35  ;;  %v2293_v39 = vpop.eup %2292  ;;  %v1026_v8 = vsel %vm717_vm10, %v1022_v38, 0.0 }
 0x5ca   :  { %v716_v40 = vadd.f32 1e-10, %v2293_v39 }
 0x5cb   :  { %v1023_v37 = vsel %vm717_vm10, %v1021_v36, 0.0 }
 0x5cc   :  { %1024 = vadd.xlane.f32.xlu1 %v1023_v37  ;;  %v721_v41 = vsel %vm717_vm10, %v716_v40, 0.0  ;;  %v1446_v37 = vld [vmem:[%s2720_s11 + $0x10] sm:$0xff] }
 0x5d0   :  { %1027 = vadd.xlane.f32.xlu1 %v1026_v8 }
 0x5d4   :  { %722 = vadd.xlane.f32.xlu1 %v721_v41 }
 0x64d   :  { %v720_v43 = vpop.xlane.xlu0 %719 }
 0x64e   :  { %2294 = vrcp.f32 %v720_v43 }
 0x64f   :  { %2296 = vrcp.f32 %v1135_v42  ;;  %v1444_v42 = vld [vmem:[%s2720_s11] sm:$0xff] }
 0x655   :  { %v1025_v44 = vpop.xlane.xlu1 %1024 }
 0x656   :  { %2298 = vrcp.f32 %v1025_v44 }
 0x659   :  { %v1028_v45 = vpop.xlane.xlu1 %1027 }
 0x65a   :  { %2300 = vrcp.f32 %v1028_v45 }
 0x65b   :  { %v2295_v46 = vpop.eup %2294 }
 0x65c   :  { %v2606_v48 = vmul.f32 %v2295_v46, %v715_v32  ;;  %v2297_v49 = vpop.eup %2296 }
 0x65d   :  { %v723_v50 = vpop.xlane.xlu1 %722 }
 0x65e   :  { %2302 = vrcp.f32 %v723_v50  ;;  %v1141_v52 = vmul.f32 %v2297_v49, %v2606_v48 }
 0x65f   :  { %2304 = vrcp.f32 %v1136_v47 }
 0x660   :  { %2197 = vmatprep.mubr.msk.f32.mxu0 %vm717_vm10, %v1141_v52  ;;  %v1145_v54 = vsel %vm717_vm10, %v1141_v52, 0.0 }
 0x663   :  { %v2299_v55 = vpop.eup %2298 }
 0x664   :  { %v1031_v56 = vmul.f32 %v2299_v55, %v1021_v36 }
 0x666   :  { %2306 = vlog2.f32 %v1031_v56 }
 0x667   :  { %v2301_v18 = vpop.eup %2300 }
 0x668   :  { %v1032_v58 = vmul.f32 %v2301_v18, %v1022_v38 }
 0x66a   :  { %2308 = vlog2.f32 %v1032_v58 }
 0x66b   :  { %v2303_v60 = vpop.eup %2302  ;;  %2310 = vpow2.f32 %v423_v20  ;;  %v2660_v20 = vand.u32 127, %v299_v16 }
 0x66c   :  { %v2610_v62 = vmul.f32 %v2303_v60, %v716_v40  ;;  %v2305_v63 = vpop.eup %2304  ;;  %2312 = vpow2.f32 %v425_v23  ;;  %v1445_v40 = vld [vmem:[%s2720_s11 + $0x8] sm:$0xff] }
 0x66e   :  { %v1142_v3 = vmul.f32 %v2305_v63, %v2610_v62 }
 0x670   :  { %2198 = vmatmul.mubr.msk.f32.vlgmr.msra.gmra.mxu0 %vm717_vm10, %v1142_v3  ;;  %v1148_v14 = vsel %vm717_vm10, %v1142_v3, 0.0 }
 0x671   :  { %2206 = vmatpush3.xpose.msk.msra.mxu0 %vm133_vm2, %v2598_v57  ;;  %v1447_v57 = vld [vmem:[%s2720_s11 + $0x18] sm:$0xff]  ;;  %s2344_s11 = smov [#allocation2]  }
 0x672   :  { %2207 = vmatprep.subr.msk.mxu0 %vm133_vm2, %v818_v4  ;;  %2212 = vmatprep.subr.mxu1 %v1447_v57  ;;  %s1971_s18 = sshll.u32 %s2344_s11, 4  ;;  %s1972_s18 = int_to_ptr.vmem [resolvable:$true] %s1971_s18 }
 0x673   :  { %v2307_v5 = vpop.eup %2306  ;;  %s2318_s1 = scalar_lea.vmem %s1972_s18, 256  ;;  %p2323_p1 = scmp.lt.s32.totalorder %s1972_s18, %s1972_s18 }
 0x674   :  { %v1037_v6 = vmul.f32 0.6931472, %v2307_v5  ;;  %p2319_p0 = scmp.ne.s32.totalorder %s1972_s18, %s2318_s1  ;;  %p2324_p2 = scmp.lt.s32.totalorder %s2318_s1, %s2318_s1 }
 0x675   :  { %2208 = vmatpush3.xpose.msk.msra.mxu0 %vm133_vm2, %v818_v4 }
 0x676   :  { %v1040_v10 = vsel %vm717_vm10, %v1037_v6, 0.0  ;;  %p2325_p3 = por %p2324_p2, %p2323_p1 }
 0x677   :  { %v2309_v11 = vpop.eup %2308  ;;  %1041 = vadd.xlane.f32.xlu0 %v1040_v10 }
 0x678   :  { %v1039_v12 = vmul.f32 0.6931472, %v2309_v11  ;;  %v2311_v32 = vpop.eup %2310  ;;  %v1702_v11 = vadd.s32 24, %v2470_v17  ;;  %p2326_p4 = pnand %p2325_p3, %p2319_p0 }
 0x679   :  { %v1991_v36 = vadd.f32 -1.0, %v2311_v32  ;;  %v2313_v38 = vpop.eup %2312 }
 0x67a   :  { %v1043_v13 = vsel %vm717_vm10, %v1039_v12, 0.0  ;;  %v1992_v43 = vadd.f32 -1.0, %v2313_v38  ;;  %v1705_v22 = vadd.s32 8, %v1702_v11 }
 0x67b   :  { %1044 = vadd.xlane.f32.xlu1 %v1043_v13  ;;  %1146 = vadd.xlane.f32.xlu0 %v1145_v54  ;;  %v429_v41 = vsel %vm419_vm6, %v2514_v61, %v1991_v36 }
 0x67c   :  { %v430_v45 = vsel %vm420_vm7, %v2511_v59, %v1992_v43  ;;  %vm1709_vm8 = vcmp.eq.s32.totalorder %v2660_v20, %v1705_v22 }
 0x67f   :  { %1149 = vadd.xlane.f32.xlu1 %v1148_v14  ;;  %v1701_v14 = vadd.s32 16, %v2470_v17 }
 0x700   :  { %v1042_v1 = vpop.xlane.xlu0 %1041 }
 0x701   :  { %v1046_v24 = vmul.f32 %v1042_v1, %v2606_v48  ;;  %v1704_v1 = vadd.s32 8, %v1701_v14 }
 0x703   :  { %v1133_v26 = vsub.f32 %v1046_v24, %v1124_v2  ;;  %vm1708_vm11 = vcmp.eq.s32.totalorder %v2660_v20, %v1704_v1 }
 0x704   :  { %v1045_v27 = vpop.xlane.xlu1 %1044  ;;  %v1147_v46 = vpop.xlane.xlu0 %1146 }
 0x705   :  { %v1139_v28 = vmul.f32 %v1133_v26, %v2606_v48  ;;  %v1047_v29 = vmul.f32 %v1045_v27, %v2610_v62  ;;  %v1151_v56 = vmul.f32 %v1147_v46, %v2514_v61 }
 0x707   :  { %v1143_v30 = vmul.f32 %v2297_v49, %v1139_v28  ;;  %v1134_v31 = vsub.f32 %v1047_v29, %v2194_v9  ;;  %v1329_v8 = vsel %vm717_vm10, %v1139_v28, 0.0  ;;  %v1700_v9 = vadd.s32 8, %v2470_v17 }
 0x708   :  { %v1150_v47 = vpop.xlane.xlu1 %1149 }
 0x709   :  { %v1140_v33 = vmul.f32 %v1134_v31, %v2610_v62  ;;  %2202 = vmatprep.mubr.msk.f32.mxu1 %vm717_vm10, %v1143_v30  ;;  %v1238_v34 = vsel %vm717_vm10, %v1143_v30, 0.0  ;;  %v1152_v18 = vmul.f32 %v2511_v59, %v1150_v47  ;;  %v1703_v24 = vadd.s32 8, %v1700_v9 }
 0x70a   :  { %1239 = vadd.xlane.f32.xlu0 %v1238_v34  ;;  %vm1706_vm13 = vcmp.eq.s32.totalorder %v2660_v20, %v1700_v9 }
 0x70b   :  { %v1144_v35 = vmul.f32 %v2305_v63, %v1140_v33  ;;  %v1332_v44 = vsel %vm717_vm10, %v1140_v33, 0.0  ;;  %vm1707_vm12 = vcmp.eq.s32.totalorder %v2660_v20, %v1703_v24 }
 0x70d   :  { %2203 = vmatmul.mubr.msk.f32.vlgmr.msra.gmra.mxu1 %vm717_vm10, %v1144_v35  ;;  %v1241_v39 = vsel %vm717_vm10, %v1144_v35, 0.0 }
 0x70e   :  { %2213 = vmatpush3.msra.mxu1 %v1447_v57  ;;  %1242 = vadd.xlane.f32.xlu1 %v1241_v39 }
 0x70f   :  { %2214 = vmatprep.subr.mxu1 %v1446_v37  ;;  %1330 = vadd.xlane.f32.xlu0 %v1329_v8 }
 0x710   :  { %2220 = vmatprep.mubr.msk.f32.mxu1 %vm133_vm2, %v429_v41  ;;  %2215 = vmatpush3.msra.mxu1 %v1446_v37 }
 0x711   :  { %2216 = vmatprep.subr.mxu1 %v1445_v40 }
 0x712   :  { %2217 = vmatpush3.msra.mxu1 %v1445_v40  ;;  %1333 = vadd.xlane.f32.xlu1 %v1332_v44  ;;  %v1874_v40 = vadd.s32 40, %v2470_v17 }
 0x713   :  { %2218 = vmatprep.subr.mxu1 %v1444_v42 }
 0x714   :  { %2219 = vmatpush3.msra.mxu1 %v1444_v42  ;;  %vm1875_vm14 = vcmp.eq.s32.totalorder %v2660_v20, %v1874_v40 }
 0x715   :  { %2221 = vmatmul.mubr.msk.f32.vlgmr.msra.gmra.mxu1 %vm133_vm2, %v430_v45  ;;  %v2044_v41 = vsel %vm1875_vm14, 1.0, %v2340_v7 }
 0x730   :  { %v2199_v49 = vpop.f32.mrf.mxu0 }
 0x731   :  { %v1237_v5 = vsub.f32 %v1152_v18, %v2199_v49 }
 0x732   :  { %v1227_v55 = vpop.f32.mrf.mxu0 }
 0x733   :  { %v1236_v0 = vsub.f32 %v1151_v56, %v1227_v55 }
 0x793   :  { %v1240_v50 = vpop.xlane.xlu0 %1239 }
 0x794   :  { %v1244_v3 = vmul.f32 %v1240_v50, %v2514_v61 }
 0x797   :  { %v1243_v52 = vpop.xlane.xlu1 %1242 }
 0x798   :  { %v1245_v58 = vmul.f32 %v2511_v59, %v1243_v52  ;;  %v1331_v60 = vpop.xlane.xlu0 %1330 }
 0x799   :  { %v1335_v12 = vmul.f32 %v1331_v60, %v1236_v0 }
 0x79b   :  { %v1334_v4 = vpop.xlane.xlu1 %1333 }
 0x79c   :  { %v1336_v54 = vmul.f32 %v1334_v4, %v1237_v5 }
 0x7cd   :  { %v2204_v63 = vpop.f32.mrf.mxu1 }
 0x7ce   :  { %v1328_v6 = vsub.f32 %v1245_v58, %v2204_v63 }
 0x7cf   :  { %v1318_v10 = vpop.f32.mrf.mxu1 }
 0x7d0   :  { %v1327_v13 = vsub.f32 %v1244_v3, %v1318_v10  ;;  %v1338_v19 = vsub.f32 %v1336_v54, %v1328_v6 }
 0x7d2   :  { %v1337_v57 = vsub.f32 %v1335_v12, %v1327_v13 }
 0x7d4   :  { %2209 = vmatprep.mubr.msk.f32.mxu0 %vm133_vm2, %v1337_v57 }
 0x7d5   :  { %v2222_v23 = vpop.f32.mrf.mxu1  ;;  %2210 = vmatmul.mubr.msk.f32.vlgmr.msra.gmra.mxu0 %vm133_vm2, %v1338_v19 }
 0x7d6   :  { %2223 = vmatprep.subr.mxu0 %v2222_v23  ;;  %2227 = vmatprep.mubr.msk.f32.mxu0 %vm315_vm5, %v2479_v21 }
 0x7d7   :  { %v1520_v2 = vpop.f32.mrf.mxu1  ;;  %2224 = vmatpush3.msra.mxu0 %v2222_v23 }
 0x7d8   :  { %2225 = vmatprep.subr.mxu0 %v1520_v2 }
 0x7d9   :  { %2226 = vmatpush3.msra.mxu0 %v1520_v2 }
 0x7da   :  { %2228 = vmatmul.mubr.msk.f32.vlgmr.msra.gmra.mxu0 %vm315_vm5, %v2485_v25  ;;  %2237 = vmatprep.subr.msk.mxu0 %vm1709_vm8, %v2343_v15 }
 0x7db   :  { %2238 = vmatpush3.msk.msra.mxu0 %vm1709_vm8, %v2343_v15  ;;  %2245 = vmatprep.mubr.msk.f32.mxu0 %vm133_vm2, %v2514_v61 }
 0x7dc   :  { %2239 = vmatprep.subr.msk.mxu0 %vm1708_vm11, %v2343_v15 }
 0x7dd   :  { %2240 = vmatpush3.msk.msra.mxu0 %vm1708_vm11, %v2343_v15 }
 0x7de   :  { %2241 = vmatprep.subr.msk.mxu0 %vm1707_vm12, %v2343_v15 }
 0x7df   :  { %2242 = vmatpush3.msk.msra.mxu0 %vm1707_vm12, %v2343_v15 }
 0x7e0   :  { %2243 = vmatprep.subr.msk.mxu0 %vm1706_vm13, %v2343_v15 }
 0x7e1   :  { %2244 = vmatpush3.msk.msra.mxu0 %vm1706_vm13, %v2343_v15 }
 0x7e2   :  { %2246 = vmatmul.mubr.msk.f32.vlgmr.msra.gmra.mxu0 %vm133_vm2, %v2511_v59  ;;  %vm1697_vm2 = vcmp.eq.s32.totalorder %v2660_v20, %v2470_v17 }
 0x895   :  { %v2211_v16 = vpop.f32.mrf.mxu0 }
 0x896   :  { %v1427_v21 = vmul.f32 0.0625, %v2211_v16 }
 0x897   :  { %v1417_v25 = vpop.f32.mrf.mxu0 }
 0x898   :  { %v1429_v61 = vsub.f32 %v2502_v53, %v1427_v21  ;;  %v1426_v26 = vmul.f32 0.0625, %v1417_v25 }
 0x89a   :  { %v1428_v27 = vsub.f32 %v2498_v51, %v1426_v26  ;;  %v1431_v28 = vmul.f32 %v1429_v61, %v1429_v61  ;;  %v2229_v29 = vpop.f32.mrf.mxu0 }
 0x89b   :  { %v1611_v30 = vmax.f32 %v2229_v29, 0.0 }
 0x89c   :  { %v1435_v31 = vsel %vm315_vm5, %v1431_v28, 0.0  ;;  %v1430_v32 = vmul.f32 %v1428_v27, %v1428_v27  ;;  %v1601_v33 = vpop.f32.mrf.mxu0 }
 0x89d   :  { %1436 = vadd.xlane.f32.xlu1 %v1435_v31  ;;  %v1610_v34 = vmax.f32 %v1601_v33, 0.0  ;;  %2230 = vmatprep.subr.mxu1 %v1611_v30 }
 0x89e   :  { %v1432_v59 = vsel %vm315_vm5, %v1430_v32, 0.0  ;;  %2231 = vmatpush3.msra.mxu1 %v1611_v30 }
 0x89f   :  { %1433 = vadd.xlane.f32.xlu0 %v1432_v59  ;;  %2232 = vmatprep.subr.mxu1 %v1610_v34 }
 0x8a0   :  { %2233 = vmatpush3.msra.mxu1 %v1610_v34 }
 0x8a1   :  { %2248 = vmatprep.subr.msk.mxu1 %vm1697_vm2, %v2343_v15 }
 0x8a2   :  { %v2247_v17 = vpop.f32.mrf.mxu0 }
 0x8a4   :  { %v1784_v45 = vpop.f32.mrf.mxu0 }
 0x926   :  { %v1437_v53 = vpop.xlane.xlu1 %1436 }
 0x927   :  { %v1439_v35 = vmax.f32 %v1437_v53, 1e-24 }
 0x928   :  { %v1434_v36 = vpop.xlane.xlu0 %1433 }
 0x929   :  { %v1438_v51 = vmax.f32 %v1434_v36, 1e-24  ;;  %2314 = vrsqrt.f32 %v1439_v35 }
 0x92b   :  { %2316 = vrsqrt.f32 %v1438_v51 }
 0x936   :  { %v2315_v37 = vpop.eup %2314 }
 0x937   :  { %v1443_v8 = vmul.f32 %v2315_v37, %v1429_v61 }
 0x938   :  { %v2317_v38 = vpop.eup %2316 }
 0x939   :  { %v1442_v39 = vmul.f32 %v2317_v38, %v1428_v27 }
 0x93b   :  { %2234 = vmatprep.mubr.msk.f32.mxu1 %vm315_vm5, %v1442_v39 }
 0x93c   :  { %2235 = vmatmul.mubr.msk.f32.vlgmr.msra.gmra.mxu1 %vm315_vm5, %v1443_v8 }
 0x93d   :  { %2249 = vmatpush3.msk.msra.mxu1 %vm1697_vm2, %v2343_v15 }
 0x93e   :  { %2253 = vmatprep.subr.msk.mxu1 %vm1054_vm9, %v2044_v41 }
 0x9fc   :  { %v2236_v42 = vpop.f32.mrf.mxu1 }
 0x9fe   :  { %v1684_v43 = vpop.f32.mrf.mxu1 }
 0x9ff   :  { %2250 = vmatprep.mubr.msk.f32.mxu1 %vm47_vm0, %v1684_v43 }
 0xa00   :  { %2251 = vmatmul.mubr.msk.f32.vlgmr.msra.gmra.mxu1 %vm47_vm0, %v2236_v42 }
 0xa01   :  { %2254 = vmatpush3.msk.msra.mxu1 %vm1054_vm9, %v2044_v41  ;;  %2255 = vmatprep.mubr.msk.f32.mxu1 %vm717_vm10, %v2606_v48 }
 0xa04   :  { %2256 = vmatmul.mubr.msk.f32.vlgmr.msra.gmra.mxu1 %vm717_vm10, %v2610_v62 }
 0xac0   :  { %v2252_v15 = vpop.f32.mrf.mxu1 }
 0xac1   :  { %v1871_v7 = vadd.f32 %v2252_v15, %v2247_v17 }
 0xac2   :  { %v1865_v44 = vpop.f32.mrf.mxu1 }
 0xac3   :  { %v1866_v47 = vadd.f32 %v1865_v44, %v1784_v45 }
 0xac4   :  { %v2257_v46 = vpop.f32.mrf.mxu1 }
 0xac5   :  { %v1963_v49 = vadd.f32 %v2257_v46, %v1871_v7 }
 0xac6   :  { %v1953_v50 = vpop.f32.mrf.mxu1 }
 0xac7   :  { %1965 = vst [vmem:[#allocation2 + $0x8] sm:$0xff] %v1963_v49  ;;  %v1962_v52 = vadd.f32 %v1953_v50, %v1866_v47 }
 0xac9   :  { %1964 = vst [vmem:[#allocation2] sm:$0xff] %v1962_v52 }
 0xaca   :  { %2329 = shalt.err (!%p2326_p4)
}
 0xacb   :  { %s2345_s19 = smov 128   ;;  %s2346_s3 = smov 8  }
 0xacc   :  { %1977 = dma.vmem_to_hbm [thread:$0]  %s1972_s18, 256, %s2721_s12, [#allocation3], %s2345_s19, %s2345_s19, %s2346_s3  }
 0xacd   :  { %2338 = dma.done.wait [#allocation3], 256  }
 0xace   :  { %2339 = vsyncadd [#allocation3], 4294967040 }
 0xacf   :  { %1981 = vsyncpa [#allocation3], 1 }

</bundles_post_ra>
